<compile_context>
chip_gen: v7x
topology: tpu7x:2x2x1
jax: 0.10.0
libtpu: 0.0.40
codegen_flags: <defaults>
</compile_context>

<pallas_src>
import functools

import jax
import jax.numpy as jnp
from jax.experimental import pallas as pl
from jax.experimental.pallas import tpu as pltpu


def _round_up(x, m):
    return (x + m - 1) // m * m


def _wml_kernel(out_ref, tgt_ref, part_ref, *, valid_b, tile_b, steps_per_part):
    p = pl.program_id(0)
    i = pl.program_id(1)

    @pl.when(i == 0)
    def _():
        part_ref[...] = jnp.zeros_like(part_ref)

    x = out_ref[...].astype(jnp.float32)   # logits tile   (tile_b, C)
    t = tgt_ref[...].astype(jnp.float32)   # targets tile  (tile_b, C)

    # BCEWithLogitsLoss (reduction='none'), numerically stable form:
    #   loss = max(x, 0) - x*t + log(1 + exp(-|x|))
    bce = jnp.maximum(x, 0.0) - x * t + jnp.log1p(jnp.exp(-jnp.abs(x)))

    tb, c = bce.shape
    # Unclamped logical row offset of this step (duplicate / clamped tail steps get
    # row0 >= valid_b and therefore contribute exactly zero).
    row0 = (p * steps_per_part + i) * tile_b
    tail = row0 + tile_b > valid_b

    # Vreg-shaped accumulation: pure elementwise VPU adds; cross-lane reduce deferred
    # to a tiny XLA sum in the wrapper.
    @pl.when(jnp.logical_not(tail))
    def _():
        part_ref[...] += bce.reshape(tb // 8, 8, c).sum(axis=0)

    @pl.when(tail)
    def _():
        # Only the ragged tail block pays the mask. The VMEM contents beyond valid_b are
        # undefined, so use a select (jnp.where), never multiplicative masking.
        rows = row0 + jax.lax.broadcasted_iota(jnp.int32, (tb, 1), 0)
        masked = jnp.where(rows < valid_b, bce, 0.0)
        part_ref[...] += masked.reshape(tb // 8, 8, c).sum(axis=0)


def weighted_multilabel_loss(outputs, targets, weights, *,
                             block_bytes=4 * 1024 * 1024, num_parts=2):
    """(BCEWithLogitsLoss(reduction='none')(outputs, targets) * weights).mean() -> scalar f32."""
    B, C = outputs.shape
    assert targets.shape == (B, C)
    assert weights.shape == (C,)

    itemsize = max(jnp.dtype(outputs.dtype).itemsize,
                   jnp.dtype(targets.dtype).itemsize)

    # Rows per tile from a per-input VMEM block budget. 2 inputs x 2 pipeline buffers
    # x block_bytes stays well under the explicit 48 MiB scoped-VMEM limit below on every
    # generation (v7x: 64 MiB physical). Raise block_bytes to 8-12 MiB on v5e/v6e if desired.
    max_rows = max(8, (block_bytes // (C * itemsize)) // 8 * 8)
    if max_rows >= 32:
        max_rows = max_rows // 32 * 32        # keep bf16 (16-row) / int8 (32-row) tiling aligned
    row_align = 32 if max_rows >= 32 else 8
    tile_b = min(max_rows, _round_up(B, row_align))

    total_steps = -(-B // tile_b)

    # TensorCore-parallel part axis (v7x megacore): only worth it with >= 4 steps per part;
    # on 1-TC parts (v5e/v6e) or small B it collapses to a single part.
    if num_parts < 1 or total_steps < 4 * num_parts:
        num_parts = 1
    steps_per_part = -(-total_steps // num_parts)
    last_block = total_steps - 1

    def in_map(p, i):
        # Clamp so no block index ever points past the data; duplicate tail steps re-use the
        # same block (no extra DMA) and are fully masked in-kernel via their unclamped row0.
        return (jnp.minimum(p * steps_per_part + i, last_block), 0)

    kernel = functools.partial(
        _wml_kernel, valid_b=B, tile_b=tile_b, steps_per_part=steps_per_part)

    partials = pl.pallas_call(
        kernel,
        out_shape=jax.ShapeDtypeStruct((num_parts * 8, C), jnp.float32),
        grid_spec=pltpu.PrefetchScalarGridSpec(
            num_scalar_prefetch=0,
            grid=(num_parts, steps_per_part),
            in_specs=[
                pl.BlockSpec((tile_b, C), in_map),   # logits (any float dtype)
                pl.BlockSpec((tile_b, C), in_map),   # targets (float / int / bool)
            ],
            out_specs=pl.BlockSpec((8, C), lambda p, i: (p, 0)),
        ),
        compiler_params=pltpu.CompilerParams(
            dimension_semantics=("parallel", "arbitrary"),
            vmem_limit_bytes=48 * 1024 * 1024,
        ),
    )(outputs, targets)

    # Apply the per-class weights once on the tiny (num_parts*8, C) partials and divide by the
    # ORIGINAL element count (matches torch .mean()).
    w = weights.astype(jnp.float32)
    return jnp.sum(jnp.sum(partials, axis=0) * w) / (B * C)


def _reference(outputs, targets, weights):
    x = outputs.astype(jnp.float32)
    t = targets.astype(jnp.float32)
    bce = jnp.maximum(x, 0.0) - x * t + jnp.log1p(jnp.exp(-jnp.abs(x)))
    return jnp.mean(bce * weights[None, :].astype(jnp.float32))


if __name__ == "__main__":
    key = jax.random.PRNGKey(0)

    # Cases: aligned, ragged (B and C unaligned, exercising the unpadded tail-mask path),
    # and bf16 logits passed straight through (no wrapper upcast).
    cases = [
        ((16, 128), jnp.float32),
        ((13, 100), jnp.float32),
        ((40, 96), jnp.bfloat16),
    ]
    for (B, C), out_dtype in cases:
        k1, k2, k3 = jax.random.split(jax.random.fold_in(key, B * 1000 + C), 3)
        outputs = jax.random.normal(k1, (B, C), dtype=out_dtype)              # logits
        targets = (jax.random.uniform(k2, (B, C)) > 0.5).astype(jnp.float32)  # multilabel targets
        weights = jax.random.uniform(k3, (C,), minval=0.5, maxval=1.5).astype(jnp.float32)

        loss = jax.block_until_ready(weighted_multilabel_loss(outputs, targets, weights))
        ref = jax.block_until_ready(_reference(outputs, targets, weights))
        assert jnp.allclose(loss, ref, rtol=1e-4, atol=1e-5), (B, C, out_dtype, loss, ref)

    print("KERNEL_OK")
</pallas_src>

<mosaic_0001>
module attributes {stable_mosaic.version = 11 : i64} {
  func.func @_wml_kernel(%arg0: i32, %arg1: i32, %arg2: memref<32x128xf32, #tpu.memory_space<vmem>>, %arg3: memref<32x128xf32, #tpu.memory_space<vmem>>, %arg4: memref<8x128xf32, #tpu.memory_space<vmem>>) attributes {dimension_semantics = [#tpu.dimension_semantics<parallel>, #tpu.dimension_semantics<arbitrary>], iteration_bounds = array<i64: 1, 1>, scalar_prefetch = 0 : i64, scratch_operands = 0 : i64, tpu.core_type = #tpu.core_type<tc>, window_params = [{transform_indices = @transform_0, window_bounds = array<i64: 32, 128>}, {transform_indices = @transform_1, window_bounds = array<i64: 32, 128>}, {transform_indices = @transform_2, window_bounds = array<i64: 8, 128>}]} {
    %c0_i32 = arith.constant 0 : i32
    %0 = arith.cmpi eq, %arg1, %c0_i32 : i32
    %1 = arith.extui %0 : i1 to i32
    %c0_i32_0 = arith.constant 0 : i32
    %2 = arith.cmpi ne, %1, %c0_i32_0 : i32
    scf.if %2 {
      %cst_8 = arith.constant 0.000000e+00 : f32
      %25 = vector.broadcast %cst_8 : f32 to vector<8x128xf32>
      %c0_9 = arith.constant 0 : index
      %c0_10 = arith.constant 0 : index
      %26 = vector.load %arg4[%c0_9, %c0_10] : memref<8x128xf32, #tpu.memory_space<vmem>>, vector<8x128xf32>
      tpu.vector_store %arg4[%c0_9, %c0_10], %25 {strides = array<i32>} : memref<8x128xf32, #tpu.memory_space<vmem>>, vector<8x128xf32>,
    } else {
    }
    %c0 = arith.constant 0 : index
    %c0_1 = arith.constant 0 : index
    %3 = vector.load %arg2[%c0, %c0_1] : memref<32x128xf32, #tpu.memory_space<vmem>>, vector<32x128xf32>
    %c0_2 = arith.constant 0 : index
    %c0_3 = arith.constant 0 : index
    %4 = vector.load %arg3[%c0_2, %c0_3] : memref<32x128xf32, #tpu.memory_space<vmem>>, vector<32x128xf32>
    %cst = arith.constant 0.000000e+00 : f32
    %5 = vector.broadcast %cst : f32 to vector<32x128xf32>
    %6 = arith.maximumf %3, %5 : vector<32x128xf32>
    %7 = arith.mulf %3, %4 : vector<32x128xf32>
    %8 = arith.subf %6, %7 : vector<32x128xf32>
    %9 = math.absf %3 : vector<32x128xf32>
    %cst_4 = arith.constant 0.000000e+00 : f32
    %10 = vector.broadcast %cst_4 : f32 to vector<32x128xf32>
    %11 = arith.subf %10, %9 : vector<32x128xf32>
    %12 = math.exp %11 : vector<32x128xf32>
    %13 = math.log1p %12 : vector<32x128xf32>
    %14 = arith.addf %8, %13 : vector<32x128xf32>
    %c1_i32 = arith.constant 1 : i32
    %15 = arith.muli %arg0, %c1_i32 : i32
    %16 = arith.addi %15, %arg1 : i32
    %c32_i32 = arith.constant 32 : i32
    %17 = arith.muli %16, %c32_i32 : i32
    %c32_i32_5 = arith.constant 32 : i32
    %18 = arith.addi %17, %c32_i32_5 : i32
    %c16_i32 = arith.constant 16 : i32
    %19 = arith.cmpi sgt, %18, %c16_i32 : i32
    %true = arith.constant true
    %20 = arith.xori %19, %true : i1
    %21 = arith.extui %20 : i1 to i32
    %c0_i32_6 = arith.constant 0 : i32
    %22 = arith.cmpi ne, %21, %c0_i32_6 : i32
    scf.if %22 {
      %c0_8 = arith.constant 0 : index
      %c0_9 = arith.constant 0 : index
      %25 = vector.load %arg4[%c0_8, %c0_9] : memref<8x128xf32, #tpu.memory_space<vmem>>, vector<8x128xf32>
      %26 = vector.shape_cast %14 : vector<32x128xf32> to vector<4x8x128xf32>
      %cst_10 = arith.constant dense<0.000000e+00> : vector<8x128xf32>
      %27 = vector.multi_reduction <add>, %26, %cst_10 [0] : vector<4x8x128xf32> to vector<8x128xf32>
      %28 = arith.addf %25, %27 : vector<8x128xf32>
      %c0_11 = arith.constant 0 : index
      %c0_12 = arith.constant 0 : index
      %29 = vector.load %arg4[%c0_11, %c0_12] : memref<8x128xf32, #tpu.memory_space<vmem>>, vector<8x128xf32>
      tpu.vector_store %arg4[%c0_11, %c0_12], %28 {strides = array<i32>} : memref<8x128xf32, #tpu.memory_space<vmem>>, vector<8x128xf32>,
    } else {
    }
    %23 = arith.extui %19 : i1 to i32
    %c0_i32_7 = arith.constant 0 : i32
    %24 = arith.cmpi ne, %23, %c0_i32_7 : i32
    scf.if %24 {
      %25 = tpu.iota {dimensions = array<i32: 0>} : vector<32x1xi32>
      %26 = vector.broadcast %17 : i32 to vector<32x1xi32>
      %27 = arith.addi %26, %25 : vector<32x1xi32>
      %c16_i32_8 = arith.constant 16 : i32
      %28 = vector.broadcast %c16_i32_8 : i32 to vector<32x1xi32>
      %29 = arith.cmpi slt, %27, %28 : vector<32x1xi32>
      %cst_9 = arith.constant 0.000000e+00 : f32
      %30 = vector.shape_cast %29 : vector<32x1xi1> to vector<32x1xi1>
      %31 = vector.broadcast %30 : vector<32x1xi1> to vector<32x128xi1>
      %32 = vector.broadcast %cst_9 : f32 to vector<32x128xf32>
      %33 = arith.select %31, %14, %32 : vector<32x128xi1>, vector<32x128xf32>
      %c0_10 = arith.constant 0 : index
      %c0_11 = arith.constant 0 : index
      %34 = vector.load %arg4[%c0_10, %c0_11] : memref<8x128xf32, #tpu.memory_space<vmem>>, vector<8x128xf32>
      %35 = vector.shape_cast %33 : vector<32x128xf32> to vector<4x8x128xf32>
      %cst_12 = arith.constant dense<0.000000e+00> : vector<8x128xf32>
      %36 = vector.multi_reduction <add>, %35, %cst_12 [0] : vector<4x8x128xf32> to vector<8x128xf32>
      %37 = arith.addf %34, %36 : vector<8x128xf32>
      %c0_13 = arith.constant 0 : index
      %c0_14 = arith.constant 0 : index
      %38 = vector.load %arg4[%c0_13, %c0_14] : memref<8x128xf32, #tpu.memory_space<vmem>>, vector<8x128xf32>
      tpu.vector_store %arg4[%c0_13, %c0_14], %37 {strides = array<i32>} : memref<8x128xf32, #tpu.memory_space<vmem>>, vector<8x128xf32>,
    } else {
    }
    return
  }
  func.func @transform_0(%arg0: i32, %arg1: i32) -> (i32, i32) {
    %c1_i32 = arith.constant 1 : i32
    %0 = arith.muli %arg0, %c1_i32 : i32
    %1 = arith.addi %0, %arg1 : i32
    %c0_i32 = arith.constant 0 : i32
    %2 = arith.minsi %1, %c0_i32 : i32
    %c0_i32_0 = arith.constant 0 : i32
    %c0_i32_1 = arith.constant 0 : i32
    return %2, %c0_i32_0 : i32, i32
  }
  func.func @transform_1(%arg0: i32, %arg1: i32) -> (i32, i32) {
    %c1_i32 = arith.constant 1 : i32
    %0 = arith.muli %arg0, %c1_i32 : i32
    %1 = arith.addi %0, %arg1 : i32
    %c0_i32 = arith.constant 0 : i32
    %2 = arith.minsi %1, %c0_i32 : i32
    %c0_i32_0 = arith.constant 0 : i32
    %c0_i32_1 = arith.constant 0 : i32
    return %2, %c0_i32_0 : i32, i32
  }
  func.func @transform_2(%arg0: i32, %arg1: i32) -> (i32, i32) {
    %c0_i32 = arith.constant 0 : i32
    %c0_i32_0 = arith.constant 0 : i32
    return %arg0, %c0_i32 : i32, i32
  }
}

</mosaic_0001>

<bundles_post_ra>
// kernel: tpu_custom_call.1
= control target key start
LH: loop header
LB: loop body
LE: loop exit
PB: predicated region body
PF: predicated region fallthrough
CT: control target
= control target key end

     0   :  { %7 = vsyncpa [#allocation3], 0  ;;  %s364_s0 = inlined_call_operand.hbm [shape: f32[16,128], index: 0, kind: input, shape index: {}]   ;;  %s365_s1 = inlined_call_operand.hbm [shape: f32[16,128], index: 1, kind: input, shape index: {}]   ;;  %s366_s2 = inlined_call_operand.hbm [shape: f32[8,128], index: 2, kind: output, shape index: {}]  }
   0x1   :  { %8 = vsyncpa [#allocation6], 0 }
   0x2   :  { %9 = vsyncpa [#allocation4], 0 }
   0x3   :  { %20 = vsyncadd [#allocation3], 256  ;;  %s308_s9 = smov [#allocation2]   ;;  %s236_s13 = scalar_lea.hbm %s364_s0, 256 }
   0x4   :  { %s25_s10 = sshll.u32 %s308_s9, 4  ;;  %p237_p0 = scmp.ne.s32.totalorder %s364_s0, %s236_s13  ;;  %s26_s10 = int_to_ptr.vmem [resolvable:$true] %s25_s10 }
   0x5   :  { %p240_p1 = scmp.lt.u32.totalorder %s236_s13, %s364_s0 }
   0x7   :  { %p242_p2 = pnand %p240_p1, %p237_p0 }
   0x9   :  { %245 = shalt.err (!%p242_p2)
}
   0xa   :  { %s246_s18 = scalar_lea.vmem %s26_s10, 256  ;;  %s250_s19 = scalar_lea.vmem %s26_s10, 512 }
   0xb   :  { %p247_p3 = scmp.ne.s32.totalorder %s26_s10, %s246_s18  ;;  %p251_p4 = scmp.lt.s32.totalorder %s26_s10, %s26_s10 }
   0xc   :  { %p252_p5 = scmp.lt.s32.totalorder %s250_s19, %s246_s18 }
   0xe   :  { %p253_p6 = por %p252_p5, %p251_p4 }
  0x10   :  { %p254_p7 = pnand %p253_p6, %p247_p3 }
  0x12   :  { %257 = shalt.err (!%p254_p7)
}
  0x13   :  { %s309_s20 = smov 128   ;;  %s310_s21 = smov 8  }
  0x14   :  { %31 = dma.hbm_to_vmem [thread:$0]  %s364_s0, 256, %s26_s10, [#allocation3], %s309_s20, %s309_s20, %s310_s21  }
  0x15   :  { %42 = vsyncadd [#allocation6], 256  ;;  %s311_s24 = smov [#allocation5]   ;;  %s258_s28 = scalar_lea.hbm %s365_s1, 256 }
  0x16   :  { %s47_s25 = sshll.u32 %s311_s24, 4  ;;  %p259_p8 = scmp.ne.s32.totalorder %s365_s1, %s258_s28  ;;  %s48_s25 = int_to_ptr.vmem [resolvable:$true] %s47_s25 }
  0x17   :  { %p262_p9 = scmp.lt.u32.totalorder %s258_s28, %s365_s1 }
  0x19   :  { %p264_p10 = pnand %p262_p9, %p259_p8 }
  0x1b   :  { %267 = shalt.err (!%p264_p10)
}
  0x1c   :  { %s268_s5 = scalar_lea.vmem %s48_s25, 256  ;;  %s272_s0 = scalar_lea.vmem %s48_s25, 512 }
  0x1d   :  { %p269_p11 = scmp.ne.s32.totalorder %s48_s25, %s268_s5  ;;  %p273_p12 = scmp.lt.s32.totalorder %s48_s25, %s48_s25 }
  0x1e   :  { %p274_p13 = scmp.lt.s32.totalorder %s272_s0, %s268_s5 }
  0x20   :  { %p275_p0 = por %p274_p13, %p273_p12 }
  0x22   :  { %p276_p1 = pnand %p275_p0, %p269_p11 }
  0x24   :  { %279 = shalt.err (!%p276_p1)
}
  0x25   :  { %53 = dma.hbm_to_vmem [thread:$0]  %s365_s1, 256, %s48_s25, [#allocation6], %s309_s20, %s309_s20, %s310_s21  }
  0x26   :  { %302 = dma.done.wait [#allocation3], 512  }
  0x27   :  { %303 = vsyncadd [#allocation3], 4294966784 }
  0x28   :  { %304 = dma.done.wait [#allocation6], 512  }
  0x29   :  { %305 = vsyncadd [#allocation6], 4294966784  ;;  %v77_v0 = vld [vmem:[#allocation2] sm:$0xff]  ;;  %v78_v1 = vld [vmem:[#allocation2 + $0x8] sm:$0xff]  ;;  %s312_s1 = smov [#allocation7]  }
  0x2a   :  { %v97_v2 = vand.u32 2147483647, %v77_v0  ;;  %v98_v3 = vand.u32 2147483647, %v78_v1  ;;  %v81_v14 = vld [vmem:[#allocation5] sm:$0xff]  ;;  %v82_v15 = vld [vmem:[#allocation5 + $0x8] sm:$0xff] }
  0x2b   :  { %v85_v17 = vmax.f32 %v77_v0, 0.0  ;;  %v89_v18 = vmul.f32 %v81_v14, %v77_v0  ;;  %v86_v21 = vmax.f32 %v78_v1, 0.0  ;;  %v90_v22 = vmul.f32 %v82_v15, %v78_v1  ;;  %s208_s8 = sshll.u32 %s312_s1, 4  ;;  %s209_s8 = int_to_ptr.vmem [resolvable:$true] %s208_s8 }
  0x2c   :  { %v101_v4 = vsub.f32 0.0, %v97_v2  ;;  %v102_v5 = vsub.f32 0.0, %v98_v3  ;;  %s280_s9 = scalar_lea.vmem %s209_s8, 128  ;;  %p285_p3 = scmp.lt.s32.totalorder %s209_s8, %s209_s8 }
  0x2d   :  { %v93_v26 = vsub.f32 %v85_v17, %v89_v18  ;;  %v94_v29 = vsub.f32 %v86_v21, %v90_v22  ;;  %p281_p2 = scmp.ne.s32.totalorder %s209_s8, %s280_s9  ;;  %p286_p4 = scmp.lt.s32.totalorder %s280_s9, %s280_s9 }
  0x2e   :  { %v105_v6 = vmul.f32 1.442695, %v101_v4  ;;  %v107_v7 = vmul.f32 1.442695, %v102_v5 }
  0x2f   :  { %p287_p5 = por %p286_p4, %p285_p3 }
  0x30   :  { %228 = vpow2.f32 %v105_v6 }
  0x31   :  { %230 = vpow2.f32 %v107_v7  ;;  %p288_p6 = pnand %p287_p5, %p281_p2 }
  0x3a   :  { %v229_v8 = vpop.eup %228 }
  0x3b   :  { %v231_v9 = vpop.eup %230  ;;  %v113_v10 = vadd.f32 1.0, %v229_v8  ;;  %v116_v12 = vmul.f32 -0.5, %v229_v8  ;;  %v119_v19 = vand.u32 2147483647, %v229_v8 }
  0x3c   :  { %v122_v11 = vadd.f32 1.0, %v231_v9  ;;  %v125_v13 = vmul.f32 -0.5, %v231_v9  ;;  %v128_v23 = vand.u32 2147483647, %v231_v9 }
  0x3d   :  { %232 = vlog2.f32 %v113_v10  ;;  %v117_v16 = vadd.f32 1.0, %v116_v12  ;;  %vm120_vm0 = vcmp.lt.f32.partialorder %v119_v19, 0.0004427343 }
  0x3e   :  { %234 = vlog2.f32 %v122_v11  ;;  %v126_v20 = vadd.f32 1.0, %v125_v13  ;;  %vm129_vm1 = vcmp.lt.f32.partialorder %v128_v23, 0.0004427343 }
  0x3f   :  { %v118_v24 = vmul.f32 %v229_v8, %v117_v16 }
  0x40   :  { %v127_v27 = vmul.f32 %v231_v9, %v126_v20 }
  0x47   :  { %v233_v25 = vpop.eup %232 }
  0x48   :  { %v235_v28 = vpop.eup %234  ;;  %v115_v30 = vmul.f32 0.6931472, %v233_v25 }
  0x49   :  { %v124_v31 = vmul.f32 0.6931472, %v235_v28 }
  0x4a   :  { %v121_v32 = vsel %vm120_vm0, %v118_v24, %v115_v30 }
  0x4b   :  { %v130_v33 = vsel %vm129_vm1, %v127_v27, %v124_v31  ;;  %v149_v34 = vadd.f32 %v121_v32, %v93_v26 }
  0x4c   :  { %v150_v35 = vadd.f32 %v130_v33, %v94_v29 }
  0x4e   :  { %v197_v36 = vadd.f32 %v150_v35, %v149_v34 }
  0x50   :  { %201 = vst [vmem:[#allocation7] sm:$0xff] %v197_v36 }
  0x51   :  { %291 = shalt.err (!%p288_p6)
}
  0x52   :  { %s292_s12 = scalar_lea.hbm %s366_s2, 128 }
  0x53   :  { %p293_p7 = scmp.ne.s32.totalorder %s366_s2, %s292_s12  ;;  %p296_p8 = scmp.lt.u32.totalorder %s292_s12, %s366_s2 }
  0x55   :  { %p298_p9 = pnand %p296_p8, %p293_p7 }
  0x57   :  { %301 = shalt.err (!%p298_p9)
}
  0x58   :  { %211 = dma.vmem_to_hbm [thread:$0]  %s209_s8, 128, %s366_s2, [#allocation4]  }
  0x59   :  { %306 = dma.done.wait [#allocation4], 128  }
  0x5a   :  { %307 = vsyncadd [#allocation4], 4294967168 }
  0x5b   :  { %215 = vsyncpa [#allocation3], 1 }
  0x5c   :  { %216 = vsyncpa [#allocation6], 1 }
  0x5d   :  { %217 = vsyncpa [#allocation4], 1 }

</bundles_post_ra>
